<compile_context>
chip_gen: v7x
topology: tpu7x:2x2x1
jax: 0.10.0
libtpu: 0.0.40
codegen_flags: <defaults>
</compile_context>

<pallas_src>
import functools

import jax
import jax.numpy as jnp
from jax.experimental import pallas as pl
from jax.experimental.pallas import tpu as pltpu

NEG_SLOPE = 0.01  # nn.LeakyReLU() default negative_slope


def _exp1_conv_block_kernel(x_ref, w_ref, b_ref, o_ref, *, K, stride, N, Hs,
                            H_out, W_out, W_pool, pool_kernel, C_out):
    """Conv2d + bias + LeakyReLU + AvgPool2d((1, pool_kernel)) for the whole batch.

    x_ref : (stride, N*Hs, W*C_in)      H-polyphase image rows (lane dim = W*C_in)
    w_ref : (K, W*C_in, W_out*C_out)    banded conv weights, one band per kh
    b_ref : (1, W_out*C_out)            bias tiled over W_out
    o_ref : (N, H_out, W_pool*C_out)    pooled activations, single block store
    """
    OC = W_out * C_out
    x_all = x_ref[...].astype(jnp.float32)   # (stride, N*Hs, W*C_in)
    w_all = w_ref[...].astype(jnp.float32)   # (K, W*C_in, OC)

    # ---- Conv2d as K MXU matmuls (contract W*C_in against the banded weight) ----
    acc = jnp.zeros((N, H_out, OC), jnp.float32)
    for kh in range(K):                       # K is small & static -> unrolled
        rh, oh = kh % stride, kh // stride
        full = jnp.dot(x_all[rh], w_all[kh],
                       preferred_element_type=jnp.float32)          # (N*Hs, OC)
        acc = acc + full.reshape(N, Hs, OC)[:, oh:oh + H_out, :]

    # ---- bias (added once, after the contraction) + LeakyReLU ----
    y = acc + b_ref[...].astype(jnp.float32)
    y = jnp.where(y > 0, y, NEG_SLOPE * y)

    # ---- AvgPool2d(kernel=(1, pool_kernel), stride=(1, pool_kernel)) over W ----
    if pool_kernel > 0:
        # Drop the floor-division remainder (matches PyTorch), then pool with
        # lane-slice adds: minor dim layout is (wo, co) -> ((wp, j), co).
        z = y[:, :, :W_pool * pool_kernel * C_out]
        z = z.reshape(N, H_out, W_pool, pool_kernel * C_out)
        pooled = z[..., :C_out]
        for j in range(1, pool_kernel):
            pooled = pooled + z[..., j * C_out:(j + 1) * C_out]
        pooled = pooled * jnp.float32(1.0 / pool_kernel)
        out = pooled.reshape(N, H_out, W_pool * C_out)
    else:
        out = y   # nn.Identity() path (W_pool == W_out)

    o_ref[...] = out.astype(o_ref.dtype)


def _build_banded_weights(weight_oihw, W, W_out, K, stride):
    """B[kh, w*C_in + ci, wo*C_out + co] = weight[co, ci, kh, w - stride*wo], 0 off-band."""
    C_out, C_in = weight_oihw.shape[0], weight_oihw.shape[1]
    w_t = jnp.transpose(weight_oihw, (2, 3, 1, 0))                       # (K, K, C_in, C_out)
    kw_rel = jnp.arange(W)[:, None] - stride * jnp.arange(W_out)[None, :]  # (W, W_out)
    valid = (kw_rel >= 0) & (kw_rel < K)
    kw_idx = jnp.clip(kw_rel, 0, K - 1)
    band = w_t[:, kw_idx]                                                # (K, W, W_out, C_in, C_out)
    band = jnp.where(valid[None, :, :, None, None], band, 0.0)
    band = jnp.transpose(band, (0, 1, 3, 2, 4))                          # (K, W, C_in, W_out, C_out)
    return band.reshape(K, W * C_in, W_out * C_out)


@functools.partial(jax.jit, static_argnames=("stride", "pool_kernel"))
def exp1_conv_block(x_nchw, weight_oihw, bias, *, stride, pool_kernel):
    """Forward pass of Exp1ConvBlock. Inputs follow PyTorch conventions (NCHW / OIHW)."""
    N, C_in, H, W = x_nchw.shape
    C_out, C_in_w, K, K2 = weight_oihw.shape
    assert C_in == C_in_w and K == K2

    H_out = (H - K) // stride + 1
    W_out = (W - K) // stride + 1
    W_pool = (W_out // pool_kernel) if pool_kernel > 0 else W_out

    # ---- layout plumbing (wrapper side): image rows with (w, c_in) on the lane axis ----
    x_rows = jnp.transpose(x_nchw, (0, 2, 3, 1)).reshape(N, H, W * C_in)
    if stride == 1:
        Hs = H
        x_ph = x_rows.reshape(1, N * H, W * C_in)
    else:
        # H-polyphase: x_ph[r, n*Hs + q, :] = x_rows[n, q*stride + r, :]
        Hs = -(-H // stride)
        pad = Hs * stride - H
        if pad:
            x_rows = jnp.pad(x_rows, ((0, 0), (0, pad), (0, 0)))
        x_ph = (x_rows.reshape(N, Hs, stride, W * C_in)
                .transpose(2, 0, 1, 3)
                .reshape(stride, N * Hs, W * C_in))

    w_band = _build_banded_weights(weight_oihw, W, W_out, K, stride)
    b_tile = jnp.tile(bias, W_out).reshape(1, W_out * C_out)

    kernel = functools.partial(
        _exp1_conv_block_kernel, K=K, stride=stride, N=N, Hs=Hs, H_out=H_out,
        W_out=W_out, W_pool=W_pool, pool_kernel=pool_kernel, C_out=C_out)

    out = pl.pallas_call(
        kernel,
        out_shape=jax.ShapeDtypeStruct((N, H_out, W_pool * C_out), x_nchw.dtype),
        grid=(1,),
        in_specs=[
            pl.BlockSpec(x_ph.shape, lambda i: (0, 0, 0)),
            pl.BlockSpec(w_band.shape, lambda i: (0, 0, 0)),
            pl.BlockSpec(b_tile.shape, lambda i: (0, 0)),
        ],
        out_specs=pl.BlockSpec((N, H_out, W_pool * C_out), lambda i: (0, 0, 0)),
        compiler_params=pltpu.CompilerParams(dimension_semantics=("arbitrary",)),
    )(x_ph, w_band, b_tile)

    # lane-dense kernel output -> NCHW
    out = out.reshape(N, H_out, W_pool, C_out)
    return jnp.transpose(out, (0, 3, 1, 2))


def _reference(x, weight, bias, *, stride, pool_kernel):
    y = jax.lax.conv_general_dilated(
        x, weight, window_strides=(stride, stride), padding="VALID",
        dimension_numbers=("NCHW", "OIHW", "NCHW"))
    y = y + bias[None, :, None, None]
    y = jnp.where(y > 0, y, NEG_SLOPE * y)
    if pool_kernel > 0:
        n, c, hh, ww = y.shape
        wp = ww // pool_kernel
        y = y[..., :wp * pool_kernel].reshape(n, c, hh, wp, pool_kernel).mean(-1)
    return y


if __name__ == "__main__":
    key = jax.random.PRNGKey(0)
    kx, kw, kb = jax.random.split(key, 3)

    # Primary config: Exp1ConvBlock(in_channels=4, out_channels=8, kernel=3, stride=1, pool_kernel=2)
    N, C_in, H, W = 2, 4, 16, 16
    C_out, K = 8, 3

    x = jax.random.normal(kx, (N, C_in, H, W), dtype=jnp.float32)
    weight = jax.random.normal(kw, (C_out, C_in, K, K), dtype=jnp.float32) * 0.1
    bias = jax.random.normal(kb, (C_out,), dtype=jnp.float32) * 0.1

    # Also exercise the previously-untested stride>1 and pool_kernel==0 (Identity) paths.
    for stride, pool_kernel in [(1, 2), (2, 2), (1, 0)]:
        out = exp1_conv_block(x, weight, bias, stride=stride, pool_kernel=pool_kernel)
        out = jax.block_until_ready(out)
        ref = _reference(x, weight, bias, stride=stride, pool_kernel=pool_kernel)
        assert out.shape == ref.shape, (stride, pool_kernel, out.shape, ref.shape)
        assert jnp.allclose(out, ref, atol=1e-4, rtol=1e-4), (
            f"mismatch vs reference (stride={stride}, pool_kernel={pool_kernel})")

    print("KERNEL_OK")
</pallas_src>

<mosaic_0001>
module attributes {stable_mosaic.version = 11 : i64} {
  func.func @_exp1_conv_block_kernel(%arg0: i32, %arg1: memref<1x32x64xf32, #tpu.memory_space<vmem>>, %arg2: memref<3x64x112xf32, #tpu.memory_space<vmem>>, %arg3: memref<1x112xf32, #tpu.memory_space<vmem>>, %arg4: memref<2x14x56xf32, #tpu.memory_space<vmem>>) attributes {dimension_semantics = [#tpu.dimension_semantics<arbitrary>], iteration_bounds = array<i64: 1>, scalar_prefetch = 0 : i64, scratch_operands = 0 : i64, tpu.core_type = #tpu.core_type<tc>, window_params = [{pipeline_mode = #tpu.pipeline_mode<synchronous>, transform_indices = @transform_0, window_bounds = array<i64: 1, 32, 64>}, {pipeline_mode = #tpu.pipeline_mode<synchronous>, transform_indices = @transform_1, window_bounds = array<i64: 3, 64, 112>}, {pipeline_mode = #tpu.pipeline_mode<synchronous>, transform_indices = @transform_2, window_bounds = array<i64: 1, 112>}, {pipeline_mode = #tpu.pipeline_mode<synchronous>, transform_indices = @transform_3, window_bounds = array<i64: 2, 14, 56>}]} {
    %c0 = arith.constant 0 : index
    %c0_0 = arith.constant 0 : index
    %c0_1 = arith.constant 0 : index
    %0 = vector.load %arg1[%c0, %c0_0, %c0_1] : memref<1x32x64xf32, #tpu.memory_space<vmem>>, vector<1x32x64xf32>
    %c0_2 = arith.constant 0 : index
    %c0_3 = arith.constant 0 : index
    %c0_4 = arith.constant 0 : index
    %1 = vector.load %arg2[%c0_2, %c0_3, %c0_4] : memref<3x64x112xf32, #tpu.memory_space<vmem>>, vector<3x64x112xf32>
    %cst = arith.constant 0.000000e+00 : f32
    %2 = vector.broadcast %cst : f32 to vector<2x14x112xf32>
    %3 = vector.shape_cast %0 : vector<1x32x64xf32> to vector<32x64xf32>
    %4 = vector.extract_strided_slice %1 {offsets = [0, 0, 0], sizes = [1, 64, 112], strides = [1, 1, 1]} : vector<3x64x112xf32> to vector<1x64x112xf32>
    %5 = vector.shape_cast %4 : vector<1x64x112xf32> to vector<64x112xf32>
    %cst_5 = arith.constant dense<0.000000e+00> : vector<32x112xf32>
    %6 = tpu.matmul %3, %5, %cst_5 {dimension_numbers = #tpu.dot_dimension_numbers<[1], [0], [0], [1], [0, 0, 1, 1], [], []>} : vector<32x64xf32>, vector<64x112xf32>, vector<32x112xf32> -> vector<32x112xf32>
    %7 = vector.shape_cast %6 : vector<32x112xf32> to vector<2x16x112xf32>
    %8 = vector.extract_strided_slice %7 {offsets = [0, 0, 0], sizes = [2, 14, 112], strides = [1, 1, 1]} : vector<2x16x112xf32> to vector<2x14x112xf32>
    %9 = arith.addf %2, %8 : vector<2x14x112xf32>
    %10 = vector.shape_cast %0 : vector<1x32x64xf32> to vector<32x64xf32>
    %11 = vector.extract_strided_slice %1 {offsets = [1, 0, 0], sizes = [1, 64, 112], strides = [1, 1, 1]} : vector<3x64x112xf32> to vector<1x64x112xf32>
    %12 = vector.shape_cast %11 : vector<1x64x112xf32> to vector<64x112xf32>
    %cst_6 = arith.constant dense<0.000000e+00> : vector<32x112xf32>
    %13 = tpu.matmul %10, %12, %cst_6 {dimension_numbers = #tpu.dot_dimension_numbers<[1], [0], [0], [1], [0, 0, 1, 1], [], []>} : vector<32x64xf32>, vector<64x112xf32>, vector<32x112xf32> -> vector<32x112xf32>
    %14 = vector.shape_cast %13 : vector<32x112xf32> to vector<2x16x112xf32>
    %15 = vector.extract_strided_slice %14 {offsets = [0, 1, 0], sizes = [2, 14, 112], strides = [1, 1, 1]} : vector<2x16x112xf32> to vector<2x14x112xf32>
    %16 = arith.addf %9, %15 : vector<2x14x112xf32>
    %17 = vector.shape_cast %0 : vector<1x32x64xf32> to vector<32x64xf32>
    %18 = vector.extract_strided_slice %1 {offsets = [2, 0, 0], sizes = [1, 64, 112], strides = [1, 1, 1]} : vector<3x64x112xf32> to vector<1x64x112xf32>
    %19 = vector.shape_cast %18 : vector<1x64x112xf32> to vector<64x112xf32>
    %cst_7 = arith.constant dense<0.000000e+00> : vector<32x112xf32>
    %20 = tpu.matmul %17, %19, %cst_7 {dimension_numbers = #tpu.dot_dimension_numbers<[1], [0], [0], [1], [0, 0, 1, 1], [], []>} : vector<32x64xf32>, vector<64x112xf32>, vector<32x112xf32> -> vector<32x112xf32>
    %21 = vector.shape_cast %20 : vector<32x112xf32> to vector<2x16x112xf32>
    %22 = vector.extract_strided_slice %21 {offsets = [0, 2, 0], sizes = [2, 14, 112], strides = [1, 1, 1]} : vector<2x16x112xf32> to vector<2x14x112xf32>
    %23 = arith.addf %16, %22 : vector<2x14x112xf32>
    %c0_8 = arith.constant 0 : index
    %c0_9 = arith.constant 0 : index
    %24 = vector.load %arg3[%c0_8, %c0_9] : memref<1x112xf32, #tpu.memory_space<vmem>>, vector<1x112xf32>
    %25 = vector.shape_cast %24 : vector<1x112xf32> to vector<1x1x112xf32>
    %26 = vector.broadcast %25 : vector<1x1x112xf32> to vector<2x14x112xf32>
    %27 = arith.addf %23, %26 : vector<2x14x112xf32>
    %cst_10 = arith.constant 0.000000e+00 : f32
    %28 = vector.broadcast %cst_10 : f32 to vector<2x14x112xf32>
    %29 = arith.cmpf ogt, %27, %28 : vector<2x14x112xf32>
    %cst_11 = arith.constant 0.00999999977 : f32
    %30 = vector.broadcast %cst_11 : f32 to vector<2x14x112xf32>
    %31 = arith.mulf %30, %27 : vector<2x14x112xf32>
    %32 = arith.select %29, %27, %31 : vector<2x14x112xi1>, vector<2x14x112xf32>
    %33 = vector.shape_cast %32 : vector<2x14x112xf32> to vector<2x14x7x16xf32>
    %34 = vector.extract_strided_slice %33 {offsets = [0, 0, 0, 0], sizes = [2, 14, 7, 8], strides = [1, 1, 1, 1]} : vector<2x14x7x16xf32> to vector<2x14x7x8xf32>
    %35 = vector.extract_strided_slice %33 {offsets = [0, 0, 0, 8], sizes = [2, 14, 7, 8], strides = [1, 1, 1, 1]} : vector<2x14x7x16xf32> to vector<2x14x7x8xf32>
    %36 = arith.addf %34, %35 : vector<2x14x7x8xf32>
    %cst_12 = arith.constant 5.000000e-01 : f32
    %37 = vector.broadcast %cst_12 : f32 to vector<2x14x7x8xf32>
    %38 = arith.mulf %36, %37 : vector<2x14x7x8xf32>
    %39 = vector.shape_cast %38 : vector<2x14x7x8xf32> to vector<2x14x56xf32>
    %c0_13 = arith.constant 0 : index
    %c0_14 = arith.constant 0 : index
    %c0_15 = arith.constant 0 : index
    %40 = vector.load %arg4[%c0_13, %c0_14, %c0_15] : memref<2x14x56xf32, #tpu.memory_space<vmem>>, vector<2x14x56xf32>
    tpu.vector_store %arg4[%c0_13, %c0_14, %c0_15], %39 {strides = array<i32>} : memref<2x14x56xf32, #tpu.memory_space<vmem>>, vector<2x14x56xf32>,
    return
  }
  func.func @transform_0(%arg0: i32) -> (i32, i32, i32) {
    %c0_i32 = arith.constant 0 : i32
    %c0_i32_0 = arith.constant 0 : i32
    %c0_i32_1 = arith.constant 0 : i32
    %c0_i32_2 = arith.constant 0 : i32
    return %c0_i32, %c0_i32_0, %c0_i32_1 : i32, i32, i32
  }
  func.func @transform_1(%arg0: i32) -> (i32, i32, i32) {
    %c0_i32 = arith.constant 0 : i32
    %c0_i32_0 = arith.constant 0 : i32
    %c0_i32_1 = arith.constant 0 : i32
    %c0_i32_2 = arith.constant 0 : i32
    return %c0_i32, %c0_i32_0, %c0_i32_1 : i32, i32, i32
  }
  func.func @transform_2(%arg0: i32) -> (i32, i32) {
    %c0_i32 = arith.constant 0 : i32
    %c0_i32_0 = arith.constant 0 : i32
    %c0_i32_1 = arith.constant 0 : i32
    return %c0_i32, %c0_i32_0 : i32, i32
  }
  func.func @transform_3(%arg0: i32) -> (i32, i32, i32) {
    %c0_i32 = arith.constant 0 : i32
    %c0_i32_0 = arith.constant 0 : i32
    %c0_i32_1 = arith.constant 0 : i32
    %c0_i32_2 = arith.constant 0 : i32
    return %c0_i32, %c0_i32_0, %c0_i32_1 : i32, i32, i32
  }
}

</mosaic_0001>

<bundles_post_ra>
// kernel: tile.8
= control target key start
LH: loop header
LB: loop body
LE: loop exit
PB: predicated region body
PF: predicated region fallthrough
CT: control target
= control target key end

     0   :  { %s28_s0 = inlined_call_operand.vmem [shape: f32[8], index: 0, kind: input, shape index: {}]   ;;  %s29_s1 = inlined_call_operand.vmem [shape: f32[14,8], index: 1, kind: output, shape index: {}]  }
   0x1   :  { %v4_v0 = vld [vmem:[%s28_s0] ss:$0 sm:$0xff] }
   0x2   :  { %5 = vst [vmem:[%s29_s1] sm:$0xff] %v4_v0  ;;  %8 = vst [vmem:[%s29_s1 + $0x8] sm:$0xff] %v4_v0 }

// kernel: tile.9
= control target key start
LH: loop header
LB: loop body
LE: loop exit
PB: predicated region body
PF: predicated region fallthrough
CT: control target
= control target key end

     0   :  { %s115_s10 = smov 104   ;;  %s116_s11 = smov 88   ;;  %vm3_vm0 = vcmask 64512   ;;  %vm9_vm1 = vcmask 917312   ;;  %vm15_vm2 = vcmask 851712   ;;  %vm21_vm3 = vcmask 786112   ;;  %s183_s0 = inlined_call_operand.vmem [shape: f32[14,8], index: 0, kind: input, shape index: {}]   ;;  %s184_s1 = inlined_call_operand.vmem [shape: f32[1,112], index: 1, kind: output, shape index: {}]  }
   0x1   :  { %v89_v0 = vld [vmem:[%s183_s0 + $0xd] sm:$0x1]   ;;  %v91_v1 = vld [vmem:[%s183_s0 + $0xb] sm:$0x1]   ;;  %v90_v2 = vld [vmem:[%s183_s0 + $0xc] sm:$0x1]  }
   0x2   :  { %7 = vrot.lane.b32.xlu0 %v89_v0, %s115_s10  ;;  %19 = vrot.lane.b32.xlu1 %v91_v1, %s116_s11  ;;  %v92_v3 = vld [vmem:[%s183_s0 + $0xa] sm:$0x1]   ;;  %s117_s16 = smov 96   ;;  %s118_s17 = smov 80   ;;  %v93_v4 = vld [vmem:[%s183_s0 + $0x9] sm:$0x1]  }
   0x3   :  { %v94_v5 = vld [vmem:[%s183_s0 + $0x8] sm:$0x1]   ;;  %v2_v6 = vld [vmem:[%s183_s0] sm:$0x1]   ;;  %s119_s24 = smov 72   ;;  %s120_s25 = smov 64  }
   0x4   :  { %4 = vst.msk [vmem:[#allocation0] sm:$0x1] %vm3_vm0, %v2_v6   ;;  %v95_v7 = vld [vmem:[%s183_s0 + $0x7] sm:$0x1]   ;;  %v96_v8 = vld [vmem:[%s183_s0 + $0x6] sm:$0x1]  }
   0x5   :  { %s121_s30 = smov 56   ;;  %s122_s2 = smov 48   ;;  %v97_v9 = vld [vmem:[%s183_s0 + $0x5] sm:$0x1]   ;;  %v98_v10 = vld [vmem:[%s183_s0 + $0x4] sm:$0x1]  }
   0x6   :  { %13 = vrot.lane.b32.xlu0 %v90_v2, %s117_s16  ;;  %25 = vrot.lane.b32.xlu1 %v92_v3, %s118_s17  ;;  %s123_s7 = smov 40   ;;  %s124_s8 = smov 32   ;;  %v99_v11 = vld [vmem:[%s183_s0 + $0x3] sm:$0x1]   ;;  %v100_v12 = vld [vmem:[%s183_s0 + $0x2] sm:$0x1]  }
   0x7   :  { %s125_s13 = smov 24   ;;  %s126_s14 = smov 16   ;;  %v101_v13 = vld [vmem:[%s183_s0 + $0x1] sm:$0x1]   ;;  %vm27_vm4 = vcmask 720512   ;;  %vm33_vm5 = vcmask 654912  }
   0x8   :  { %s127_s0 = smov 8   ;;  %vm39_vm6 = vcmask 589312   ;;  %vm45_vm7 = vcmask 523712   ;;  %vm51_vm8 = vcmask 458112   ;;  %vm57_vm9 = vcmask 392512  }
   0x9   :  { %vm63_vm10 = vcmask 326912   ;;  %vm69_vm11 = vcmask 261312   ;;  %vm75_vm12 = vcmask 195712   ;;  %vm81_vm13 = vcmask 130112  }
   0xa   :  { %31 = vrot.lane.b32.xlu0 %v93_v4, %s119_s24  ;;  %37 = vrot.lane.b32.xlu1 %v94_v5, %s120_s25 }
   0xe   :  { %43 = vrot.lane.b32.xlu0 %v95_v7, %s121_s30  ;;  %49 = vrot.lane.b32.xlu1 %v96_v8, %s122_s2 }
  0x12   :  { %55 = vrot.lane.b32.xlu0 %v97_v9, %s123_s7  ;;  %61 = vrot.lane.b32.xlu1 %v98_v10, %s124_s8 }
  0x16   :  { %67 = vrot.lane.b32.xlu0 %v99_v11, %s125_s13  ;;  %73 = vrot.lane.b32.xlu1 %v100_v12, %s126_s14 }
  0x1a   :  { %79 = vrot.lane.b32.xlu0 %v101_v13, %s127_s0 }
  0x74   :  { %v8_v14 = vpop.permute.xlu0 %7   ;;  %v20_v15 = vpop.permute.xlu1 %19  }
  0x75   :  { %10 = vst.msk [vmem:[#allocation0] sm:$0x1] %vm9_vm1, %v8_v14  }
  0x78   :  { %v14_v16 = vpop.permute.xlu0 %13   ;;  %v26_v17 = vpop.permute.xlu1 %25  }
  0x79   :  { %16 = vst.msk [vmem:[#allocation0] sm:$0x1] %vm15_vm2, %v14_v16  }
  0x7a   :  { %22 = vst.msk [vmem:[#allocation0] sm:$0x1] %vm21_vm3, %v20_v15  }
  0x7b   :  { %28 = vst.msk [vmem:[#allocation0] sm:$0x1] %vm27_vm4, %v26_v17  }
  0x7c   :  { %v32_v18 = vpop.permute.xlu0 %31   ;;  %v38_v19 = vpop.permute.xlu1 %37  }
  0x7d   :  { %34 = vst.msk [vmem:[#allocation0] sm:$0x1] %vm33_vm5, %v32_v18  }
  0x7e   :  { %40 = vst.msk [vmem:[#allocation0] sm:$0x1] %vm39_vm6, %v38_v19  }
  0x80   :  { %v44_v20 = vpop.permute.xlu0 %43   ;;  %v50_v21 = vpop.permute.xlu1 %49  }
  0x81   :  { %46 = vst.msk [vmem:[#allocation0] sm:$0x1] %vm45_vm7, %v44_v20  }
  0x82   :  { %52 = vst.msk [vmem:[#allocation0] sm:$0x1] %vm51_vm8, %v50_v21  }
  0x84   :  { %v56_v22 = vpop.permute.xlu0 %55   ;;  %v62_v23 = vpop.permute.xlu1 %61  }
  0x85   :  { %58 = vst.msk [vmem:[#allocation0] sm:$0x1] %vm57_vm9, %v56_v22  }
  0x86   :  { %64 = vst.msk [vmem:[#allocation0] sm:$0x1] %vm63_vm10, %v62_v23  }
  0x88   :  { %v68_v24 = vpop.permute.xlu0 %67   ;;  %v74_v25 = vpop.permute.xlu1 %73  }
  0x89   :  { %70 = vst.msk [vmem:[#allocation0] sm:$0x1] %vm69_vm11, %v68_v24  }
  0x8a   :  { %76 = vst.msk [vmem:[#allocation0] sm:$0x1] %vm75_vm12, %v74_v25  }
  0x8c   :  { %v80_v26 = vpop.permute.xlu0 %79  }
  0x8d   :  { %82 = vst.msk [vmem:[#allocation0] sm:$0x1] %vm81_vm13, %v80_v26  }
  0x94   :  { %v86_v27 = vld [vmem:[#allocation0] sm:$0x1] }
  0x95   :  { %88 = vst [vmem:[%s184_s1] sm:$0x1] %v86_v27 }

// kernel: exp1_conv_block.1
= control target key start
LH: loop header
LB: loop body
LE: loop exit
PB: predicated region body
PF: predicated region fallthrough
CT: control target
= control target key end

     0   :  { %vm42_vm0 = vcmask 523264   ;;  %vm233_vm1 = vcmask 1046528   ;;  %vm337_vm2 = vcmask 1045504   ;;  %s1967_s14 = smov 96   ;;  %s1968_s15 = smov 80   ;;  %vm1741_vm7 = vcmask 64512   ;;  %s2798_s1 = inlined_call_operand.vmem [shape: f32[3,64,112], index: 1, kind: input, shape index: {}]   ;;  %s2799_s0 = inlined_call_operand.vmem [shape: f32[1,32,64], index: 0, kind: input, shape index: {}]   ;;  %s2800_s2 = inlined_call_operand.vmem [shape: f32[1,112], index: 2, kind: input, shape index: {}]   ;;  %s2801_s3 = inlined_call_operand.vmem [shape: f32[2,14,56], index: 3, kind: output, shape index: {}]  }
   0x1   :  { %v18_v0 = vld [vmem:[%s2798_s1] sm:$0xff]  ;;  %v19_v1 = vld [vmem:[%s2798_s1 + $0x8] sm:$0xff]  ;;  %v20_v5 = vld [vmem:[%s2798_s1 + $0x10] sm:$0xff]  ;;  %s1969_s16 = smov 64   ;;  %s1970_s17 = smov 32   ;;  %vm1746_vm8 = vcmask 130048  }
   0x2   :  { %v26_v2 = vld [vmem:[%s2798_s1 + $0x40] sm:$0xff]  ;;  %v1896_v3 = vpack.c.bf16 %v19_v1, %v18_v0  ;;  %v27_v4 = vld [vmem:[%s2798_s1 + $0x48] sm:$0xff]  ;;  %v21_v6 = vld [vmem:[%s2798_s1 + $0x18] sm:$0xff]  ;;  %s1971_s18 = smov 48   ;;  %s1974_s19 = smov 120   ;;  %vm1751_vm9 = vcmask 195584  }
   0x3   :  { %v1912_v7 = vpack.c.bf16 %v27_v4, %v26_v2  ;;  %v1900_v8 = vpack.c.bf16 %v21_v6, %v20_v5  ;;  %v28_v9 = vld [vmem:[%s2798_s1 + $0x50] sm:$0xff]  ;;  %v29_v10 = vld [vmem:[%s2798_s1 + $0x58] sm:$0xff]  ;;  %v22_v11 = vld [vmem:[%s2798_s1 + $0x20] sm:$0xff]  ;;  %s1976_s20 = smov 8   ;;  %s1977_s21 = smov 16   ;;  %vm1756_vm10 = vcmask 261120  }
   0x4   :  { %1897 = vmatprep.subr.bf16.mxu0 %v1896_v3  ;;  %v1916_v12 = vpack.c.bf16 %v29_v10, %v28_v9  ;;  %v23_v13 = vld [vmem:[%s2798_s1 + $0x28] sm:$0xff]  ;;  %v30_v14 = vld [vmem:[%s2798_s1 + $0x60] sm:$0xff]  ;;  %v24_v19 = vld [vmem:[%s2798_s1 + $0x30] sm:$0xff]  ;;  %s1978_s22 = smov 24   ;;  %s1979_s23 = smov 40   ;;  %vm1761_vm11 = vcmask 326656  }
   0x5   :  { %v31_v15 = vld [vmem:[%s2798_s1 + $0x68] sm:$0xff]  ;;  %1913 = vmatprep.subr.bf16.mxu1 %v1912_v7  ;;  %1899 = vmatpush3.bf16.msra.mxu0 %v1896_v3  ;;  %v1904_v16 = vpack.c.bf16 %v23_v13, %v22_v11  ;;  %v14_v17 = vld [vmem:[%s2799_s0] sm:$0xff]  ;;  %v25_v20 = vld [vmem:[%s2798_s1 + $0x38] sm:$0xff]  ;;  %vm1766_vm12 = vcmask 392192   ;;  %vm1771_vm13 = vcmask 457728   ;;  %vm1773_vm14 = vcmask 455680  }
   0x6   :  { %1915 = vmatpush3.bf16.msra.mxu1 %v1912_v7  ;;  %1901 = vmatprep.subr.bf16.mxu0 %v1900_v8  ;;  %v1920_v18 = vpack.c.bf16 %v31_v15, %v30_v14  ;;  %v32_v21 = vld [vmem:[%s2798_s1 + $0x70] sm:$0xff]  ;;  %v33_v22 = vld [vmem:[%s2798_s1 + $0x78] sm:$0xff]  ;;  %v1908_v23 = vpack.c.bf16 %v25_v20, %v24_v19  ;;  %v34_v25 = vld [vmem:[%s2798_s1 + $0x80] sm:$0xff] }
   0x7   :  { %1917 = vmatprep.subr.bf16.mxu1 %v1916_v12  ;;  %1846 = vmatprep.mubr.msk.f32.mxu0 %vm42_vm0, %v14_v17  ;;  %v1924_v24 = vpack.c.bf16 %v33_v22, %v32_v21  ;;  %v35_v26 = vld [vmem:[%s2798_s1 + $0x88] sm:$0xff]  ;;  %v36_v28 = vld [vmem:[%s2798_s1 + $0x90] sm:$0xff]  ;;  %v37_v29 = vld [vmem:[%s2798_s1 + $0x98] sm:$0xff] }
   0x8   :  { %1868 = vmatprep.mubr.msk.f32.mxu1 %vm42_vm0, %v14_v17  ;;  %v1928_v27 = vpack.c.bf16 %v35_v26, %v34_v25  ;;  %v15_v30 = vld [vmem:[%s2799_s0 + $0x8] sm:$0xff]  ;;  %v1932_v31 = vpack.c.bf16 %v37_v29, %v36_v28  ;;  %v38_v32 = vld [vmem:[%s2798_s1 + $0xa0] sm:$0xff]  ;;  %v16_v34 = vld [vmem:[%s2799_s0 + $0x10] sm:$0xff]  ;;  %v456_v29 = vlaneseq }
   0x9   :  { %1903 = vmatpush3.bf16.msra.mxu0 %v1900_v8  ;;  %v39_v33 = vld [vmem:[%s2798_s1 + $0xa8] sm:$0xff]  ;;  %v17_v35 = vld [vmem:[%s2799_s0 + $0x18] sm:$0xff]  ;;  %v40_v37 = vld [vmem:[%s2798_s1 + $0xb0] sm:$0xff] }
   0xa   :  { %1919 = vmatpush3.bf16.msra.mxu1 %v1916_v12  ;;  %1905 = vmatprep.subr.bf16.mxu0 %v1904_v16  ;;  %v1936_v36 = vpack.c.bf16 %v39_v33, %v38_v32  ;;  %v41_v38 = vld [vmem:[%s2798_s1 + $0xb8] sm:$0xff]  ;;  %v1793_v62 = vld [vmem:[%s2800_s2] ss:$0 sm:$0xff]  ;;  %s1966_s2 = smov 112   ;;  %v457_v33 = vshrl.u32 %v456_v29, 7 }
   0xb   :  { %1921 = vmatprep.subr.bf16.mxu1 %v1920_v18  ;;  %v1940_v39 = vpack.c.bf16 %v41_v38, %v40_v37 }
   0xd   :  { %1907 = vmatpush3.bf16.msra.mxu0 %v1904_v16 }
   0xe   :  { %1923 = vmatpush3.bf16.msra.mxu1 %v1920_v18  ;;  %1909 = vmatprep.subr.bf16.mxu0 %v1908_v23 }
   0xf   :  { %1925 = vmatprep.subr.bf16.mxu1 %v1924_v24 }
  0x11   :  { %1911 = vmatpush3.bf16.msra.mxu0 %v1908_v23 }
  0x12   :  { %1927 = vmatpush3.bf16.msra.mxu1 %v1924_v24  ;;  %1929 = vmatprep.subr.bf16.mxu0 %v1928_v27 }
  0x13   :  { %1944 = vmatprep.subr.bf16.mxu1 %v1928_v27 }
  0x14   :  { %1847 = vmatmul.mubr.msk.f32.vlgmr.msra.gmra.mrb[0].mxu0 %vm42_vm0, %v15_v30 }
  0x15   :  { %1869 = vmatmul.mubr.msk.f32.vlgmr.msra.gmra.mrb[0].mxu1 %vm42_vm0, %v15_v30  ;;  %1931 = vmatpush3.bf16.msra.mxu0 %v1928_v27 }
  0x16   :  { %1948 = vmatpush3.bf16.msra.mxu1 %v1928_v27  ;;  %1933 = vmatprep.subr.bf16.mxu0 %v1932_v31  ;;  %v1972_v27 = vmov 1983009808  }
  0x17   :  { %1945 = vmatprep.subr.bf16.mxu1 %v1932_v31  ;;  %1871 = vmatprep.mubr.msk.f32.mxu1 %vm42_vm0, %v16_v34  ;;  %v454_v28 = vunpack.c.l.s4 %v1972_v27 }
  0x18   :  { %1849 = vmatprep.mubr.msk.f32.mxu0 %vm42_vm0, %v16_v34 }
  0x19   :  { %1935 = vmatpush3.bf16.msra.mxu0 %v1932_v31  ;;  %1872 = vmatmul.mubr.msk.f32.gmra.mrb[2].mxu1 %vm42_vm0, %v17_v35  ;;  %v455_v32 = vunpack.c.0.s8 %v454_v28 }
  0x1a   :  { %1949 = vmatpush3.bf16.msra.mxu1 %v1932_v31  ;;  %1937 = vmatprep.subr.bf16.mxu0 %v1936_v36 }
  0x1b   :  { %1946 = vmatprep.subr.bf16.mxu1 %v1936_v36  ;;  %1850 = vmatmul.mubr.msk.f32.gmra.mrb[2].mxu0 %vm42_vm0, %v17_v35  ;;  %v2158_v37 = vsub.s32 %v455_v32, %v457_v33 }
  0x1c   :  { %1890 = vmatprep.mubr.msk.f32.mxu0 %vm42_vm0, %v14_v17  ;;  %1893 = vmatprep.mubr.msk.f32.mxu1 %vm42_vm0, %v16_v34 }
  0x1d   :  { %1939 = vmatpush3.bf16.msra.mxu0 %v1936_v36 }
  0x1e   :  { %1950 = vmatpush3.bf16.msra.mxu1 %v1936_v36  ;;  %1941 = vmatprep.subr.bf16.mxu0 %v1940_v39 }
  0x1f   :  { %1947 = vmatprep.subr.bf16.mxu1 %v1940_v39 }
  0x21   :  { %1943 = vmatpush3.bf16.msra.mxu0 %v1940_v39 }
  0x22   :  { %1951 = vmatpush3.bf16.msra.mxu1 %v1940_v39 }
  0x24   :  { %1891 = vmatmul.mubr.msk.f32.vlgmr.msra.gmra.mrb[4].mxu0 %vm42_vm0, %v15_v30 }
  0x25   :  { %1894 = vmatmul.mubr.msk.f32.vlgmr.msra.gmra.mrb[4].mxu1 %vm42_vm0, %v17_v35 }
  0xe7   :  { %v1848_v40 = vpop.f32.mrb[0].mxu0 }
  0xe8   :  { %v1870_v41 = vpop.f32.mrb[0].mxu1  ;;  %v121_v42 = vpop.f32.mrb[1].mxu0 }
  0xe9   :  { %v235_v43 = vrot.slane %v1870_v41, 1  ;;  %v210_v44 = vpop.f32.mrb[1].mxu1 }
  0xea   :  { %v234_v45 = vrot.slane %v210_v44, 1 }
  0xeb   :  { %v245_v46 = vadd.f32 %v1848_v40, %v235_v43 }
  0xec   :  { %v1873_v47 = vpop.f32.mrb[2].mxu1  ;;  %v236_v48 = vsel %vm233_vm1, %v234_v45, %v235_v43 }
  0xed   :  { %v238_v49 = vrot.slane %v1873_v47, 1  ;;  %v220_v50 = vpop.f32.mrb[3].mxu1  ;;  %v244_v51 = vadd.f32 %v236_v48, %v121_v42 }
  0xee   :  { %v237_v52 = vrot.slane %v220_v50, 1  ;;  %v1851_v53 = vpop.f32.mrb[2].mxu0 }
  0xef   :  { %v247_v54 = vadd.f32 %v1851_v53, %v238_v49  ;;  %v131_v55 = vpop.f32.mrb[3].mxu0  ;;  %v1973_v53 = vmov 1934713408  }
  0xf0   :  { %v239_v56 = vsel %vm233_vm1, %v237_v52, %v238_v49 }
  0xf1   :  { %v246_v57 = vadd.f32 %v239_v56, %v131_v55 }
  0xf7   :  { %v1892_v58 = vpop.f32.mrb[4].mxu0 }
  0xf8   :  { %v339_v59 = vrot.slane %v1892_v58, 2  ;;  %v1895_v60 = vpop.f32.mrb[4].mxu1  ;;  %v314_v61 = vpop.f32.mrb[5].mxu0 }
  0xf9   :  { %v342_v63 = vrot.slane %v1895_v60, 2  ;;  %v338_v0 = vrot.slane %v314_v61, 2  ;;  %v324_v1 = vpop.f32.mrb[5].mxu1 }
  0xfa   :  { %v349_v2 = vadd.f32 %v339_v59, %v245_v46  ;;  %v341_v3 = vrot.slane %v324_v1, 2 }
  0xfb   :  { %v351_v4 = vadd.f32 %v342_v63, %v247_v54  ;;  %v340_v5 = vsel %vm337_vm2, %v338_v0, %v339_v59  ;;  %v517_v54 = vunpack.c.l.s4 %v1973_v53 }
  0xfc   :  { %v360_v6 = vadd.f32 %v1793_v62, %v349_v2  ;;  %v348_v7 = vadd.f32 %v340_v5, %v244_v51  ;;  %v343_v8 = vsel %vm337_vm2, %v341_v3, %v342_v63 }
  0xfd   :  { %v362_v9 = vadd.f32 %v1793_v62, %v351_v4  ;;  %v350_v10 = vadd.f32 %v343_v8, %v246_v57  ;;  %v518_v61 = vunpack.c.0.s8 %v517_v54 }
  0xfe   :  { %vm364_vm3 = vcmp.gt.f32.partialorder %v360_v6, 0.0  ;;  %v368_v11 = vmul.f32 0.01, %v360_v6  ;;  %v359_v12 = vadd.f32 %v1793_v62, %v348_v7 }
  0xff   :  { %vm366_vm4 = vcmp.gt.f32.partialorder %v362_v9, 0.0  ;;  %v370_v13 = vmul.f32 0.01, %v362_v9  ;;  %v361_v18 = vadd.f32 %v1793_v62, %v350_v10  ;;  %v2211_v5 = vsub.s32 %v518_v61, %v457_v33 }
 0x100   :  { %v2099_v14 = vsel %vm364_vm3, %v360_v6, %v368_v11  ;;  %v367_v15 = vmul.f32 0.01, %v359_v12  ;;  %vm363_vm5 = vcmp.gt.f32.partialorder %v359_v12, 0.0 }
 0x101   :  { %v2101_v16 = vsel %vm366_vm4, %v362_v9, %v370_v13  ;;  %381 = vrot.lane.b32.xlu0 %v2099_v14, %s1966_s2  ;;  %v369_v19 = vmul.f32 0.01, %v361_v18  ;;  %vm365_vm6 = vcmp.gt.f32.partialorder %v361_v18, 0.0 }
 0x102   :  { %385 = vrot.lane.b32.xlu1 %v2101_v16, %s1966_s2  ;;  %v2107_v17 = vsel %vm363_vm5, %v359_v12, %v367_v15 }
 0x103   :  { %v2114_v20 = vsel %vm365_vm6, %v361_v18, %v369_v19 }
 0x105   :  { %379 = vrot.lane.b32.xlu0 %v2107_v17, %s1966_s2 }
 0x106   :  { %393 = vrot.lane.b32.xlu1 %v2099_v14, %s1967_s14 }
 0x109   :  { %391 = vrot.lane.b32.xlu0 %v2107_v17, %s1967_s14 }
 0x10a   :  { %397 = vrot.lane.b32.xlu1 %v2101_v16, %s1967_s14 }
 0x10d   :  { %395 = vrot.lane.b32.xlu0 %v2114_v20, %s1967_s14 }
 0x10e   :  { %405 = vrot.lane.b32.xlu1 %v2099_v14, %s1968_s15 }
 0x111   :  { %403 = vrot.lane.b32.xlu0 %v2107_v17, %s1968_s15 }
 0x112   :  { %409 = vrot.lane.b32.xlu1 %v2101_v16, %s1968_s15 }
 0x115   :  { %407 = vrot.lane.b32.xlu0 %v2114_v20, %s1968_s15 }
 0x116   :  { %417 = vrot.lane.b32.xlu1 %v2099_v14, %s1969_s16 }
 0x119   :  { %415 = vrot.lane.b32.xlu0 %v2107_v17, %s1969_s16 }
 0x11a   :  { %421 = vrot.lane.b32.xlu1 %v2101_v16, %s1969_s16 }
 0x11d   :  { %419 = vrot.lane.b32.xlu0 %v2114_v20, %s1969_s16 }
 0x11e   :  { %441 = vrot.lane.b32.xlu1 %v2099_v14, %s1970_s17 }
 0x121   :  { %427 = vrot.lane.b32.xlu0 %v2107_v17, %s1971_s18 }
 0x122   :  { %445 = vrot.lane.b32.xlu1 %v2101_v16, %s1970_s17 }
 0x125   :  { %439 = vrot.lane.b32.xlu0 %v2107_v17, %s1970_s17 }
 0x126   :  { %383 = vrot.lane.b32.xlu1 %v2114_v20, %s1966_s2 }
 0x129   :  { %443 = vrot.lane.b32.xlu0 %v2114_v20, %s1970_s17 }
 0x12a   :  { %431 = vrot.lane.b32.xlu1 %v2114_v20, %s1971_s18 }
 0x12d   :  { %429 = vrot.lane.b32.xlu0 %v2099_v14, %s1971_s18 }
 0x12e   :  { %433 = vrot.lane.b32.xlu1 %v2101_v16, %s1971_s18 }
 0x173   :  { %v2143_v21 = vpop.permute.xlu0 %381 }
 0x174   :  { %v386_v22 = vpop.permute.xlu1 %385 }
 0x177   :  { %v2145_v23 = vpop.permute.xlu0 %379 }
 0x178   :  { %v2147_v24 = vpop.permute.xlu1 %393 }
 0x179   :  { %v586_v57 = vcombine.low %v2099_v14, %v2147_v24  ;;  %v587_v54 = vcombine.high %v2099_v14, %v2147_v24 }
 0x17b   :  { %v2149_v25 = vpop.permute.xlu0 %391  ;;  %v594_v3 = vrot.slane %v586_v57, %v2158_v37 }
 0x17c   :  { %v398_v26 = vpop.permute.xlu1 %397 }
 0x17d   :  { %v832_v35 = vcombine.high %v2101_v16, %v398_v26  ;;  %v831_v12 = vcombine.low %v2101_v16, %v398_v26 }
 0x17f   :  { %v2151_v30 = vpop.permute.xlu0 %395  ;;  %v2163_v40 = vrot.slane %v832_v35, %v2158_v37  ;;  %v839_v32 = vrot.slane %v831_v12, %v2158_v37 }
 0x180   :  { %v2153_v31 = vpop.permute.xlu1 %405  ;;  %v697_v50 = vcombine.high %v2114_v20, %v2151_v30 }
 0x181   :  { %v602_v55 = vcombine.low %v2143_v21, %v2153_v31 }
 0x182   :  { %v2195_v58 = vrot.slane %v697_v50, %v2158_v37 }
 0x183   :  { %v2155_v34 = vpop.permute.xlu0 %403  ;;  %v610_v63 = vrot.slane %v602_v55, %v2158_v37 }
 0x184   :  { %v410_v36 = vpop.permute.xlu1 %409 }
 0x185   :  { %v848_v38 = vcombine.high %v386_v22, %v410_v36  ;;  %v642_v8 = vcombine.low %v594_v3, %v610_v63  ;;  %v847_v9 = vcombine.low %v386_v22, %v410_v36  ;;  %v643_v19 = vcombine.high %v594_v3, %v610_v63 }
 0x186   :  { %v603_v36 = vcombine.high %v2143_v21, %v2153_v31  ;;  %v467_v63 = vcombine.low %v2145_v23, %v2155_v34  ;;  %v601_v3 = vrot.slane %v587_v54, %v2158_v37 }
 0x187   :  { %v2160_v39 = vpop.permute.xlu0 %407  ;;  %v2166_v41 = vrot.slane %v848_v38, %v2158_v37  ;;  %v855_v27 = vrot.slane %v847_v9, %v2158_v37  ;;  %v650_v22 = vrot.slane %v642_v8, %v2211_v5  ;;  %v657_v53 = vrot.slane %v643_v19, %v2211_v5 }
 0x188   :  { %v2168_v42 = vpop.permute.xlu1 %417  ;;  %v617_v61 = vrot.slane %v603_v36, %v2158_v37 }
 0x189   :  { %v903_v43 = vcombine.low %v2163_v40, %v2166_v41  ;;  %v887_v38 = vcombine.low %v839_v32, %v855_v27 }
 0x18a   :  { %v658_v12 = vcombine.low %v601_v3, %v617_v61  ;;  %v696_v3 = vcombine.low %v2114_v20, %v2151_v30 }
 0x18b   :  { %v2172_v44 = vpop.permute.xlu0 %415  ;;  %v895_v24 = vrot.slane %v887_v38, %v2211_v5 }
 0x18c   :  { %v2174_v45 = vpop.permute.xlu1 %421  ;;  %v704_v30 = vrot.slane %v696_v3, %v2158_v37 }
 0x18f   :  { %v2176_v46 = vpop.permute.xlu0 %419 }
 0x190   :  { %v442_v47 = vpop.permute.xlu1 %441 }
 0x191   :  { %v618_v0 = vcombine.low %v2168_v42, %v442_v47  ;;  %v619_v50 = vcombine.high %v2168_v42, %v442_v47 }
 0x193   :  { %v2178_v48 = vpop.permute.xlu0 %427  ;;  %v626_v10 = vrot.slane %v618_v0, %v2158_v37  ;;  %v888_v0 = vcombine.high %v839_v32, %v855_v27  ;;  %v633_v14 = vrot.slane %v619_v50, %v2158_v37 }
 0x194   :  { %v2180_v49 = vpop.permute.xlu1 %445 }
 0x195   :  { %v863_v11 = vcombine.low %v2174_v45, %v2180_v49 }
 0x197   :  { %v2184_v51 = vpop.permute.xlu0 %439  ;;  %v871_v28 = vrot.slane %v863_v11, %v2158_v37 }
 0x198   :  { %v2186_v52 = vpop.permute.xlu1 %383  ;;  %v483_v55 = vcombine.low %v2172_v44, %v2184_v51  ;;  %v484_v27 = vcombine.high %v2172_v44, %v2184_v51  ;;  %v665_v44 = vrot.slane %v658_v12, %v2211_v5  ;;  %v452_v51 = vcombine.high %v2107_v17, %v2149_v25 }
 0x199   :  { %v713_v56 = vcombine.high %v2186_v52, %v2160_v39 }
 0x19a   :  { %v498_v38 = vrot.slane %v484_v27, %v2158_v37 }
 0x19b   :  { %v2198_v59 = vrot.slane %v713_v56, %v2158_v37  ;;  %v2200_v60 = vpop.permute.xlu0 %443  ;;  %v1975_v56 = vmov 0.0  }
 0x19c   :  { %v2202_v62 = vpop.permute.xlu1 %431 }
 0x19d   :  { %v775_v1 = vcombine.low %v2195_v58, %v2198_v59  ;;  %v776_v2 = vcombine.high %v2195_v58, %v2198_v59 }
 0x19f   :  { %v430_v4 = vpop.permute.xlu0 %429 }
 0x1a0   :  { %v640_v6 = vrot.slane %v430_v4, %v2158_v37  ;;  %v2214_v7 = vpop.permute.xlu1 %433  ;;  %v641_v21 = vcombine.high %v430_v4, %v1975_v56  ;;  %v451_v4 = vcombine.low %v2107_v17, %v2149_v25  ;;  %v466_v25 = vrot.slane %v452_v51, %v2158_v37 }
 0x1a1   :  { %v885_v18 = vrot.slane %v2214_v7, %v2158_v37 }
 0x1a2   :  { %v666_v13 = vcombine.low %v626_v10, %v640_v6  ;;  %v667_v15 = vcombine.high %v626_v10, %v640_v6  ;;  %v491_v6 = vrot.slane %v483_v55, %v2158_v37  ;;  %v682_v8 = vcombine.low %v633_v14, %v641_v21 }
 0x1a3   :  { %v911_v35 = vcombine.low %v871_v28, %v885_v18  ;;  %v912_v31 = vcombine.high %v871_v28, %v885_v18  ;;  %v902_v18 = vrot.slane %v888_v0, %v2211_v5  ;;  %v459_v19 = vrot.slane %v451_v4, %v2158_v37 }
 0x1a4   :  { %v674_v29 = vrot.slane %v666_v13, %v2211_v5  ;;  %v681_v33 = vrot.slane %v667_v15, %v2211_v5  ;;  %v475_v13 = vrot.slane %v467_v63, %v2158_v37  ;;  %v506_v15 = vrot.slane %v2178_v48, %v2158_v37 }
 0x1a5   :  { %v919_v42 = vrot.slane %v911_v35, %v2211_v5  ;;  %v926_v9 = vrot.slane %v912_v31, %v2211_v5  ;;  %v468_v35 = vcombine.high %v2145_v23, %v2155_v34  ;;  %v728_v31 = vcombine.low %v2176_v46, %v2200_v60 }
 0x1a6   :  { %v2228_v16 = vcombine.low %v650_v22, %v674_v29  ;;  %v2230_v26 = vcombine.high %v650_v22, %v674_v29  ;;  %v2246_v47 = vcombine.low %v657_v53, %v681_v33  ;;  %v2248_v57 = vcombine.high %v657_v53, %v681_v33 }
 0x1a7   :  { %v2264_v10 = vcombine.high %v895_v24, %v919_v42  ;;  %v2266_v11 = vcombine.low %v895_v24, %v919_v42  ;;  %v546_v28 = vcombine.low %v491_v6, %v506_v15  ;;  %v689_v29 = vrot.slane %v682_v8, %v2211_v5 }
 0x1a8   :  { %985 = vrot.lane.b32.xlu0 %v2228_v16, %s1974_s19  ;;  %987 = vrot.lane.b32.xlu1 %v2230_v26, %s1974_s19  ;;  %v2280_v22 = vcombine.high %v902_v18, %v926_v9  ;;  %v2282_v32 = vcombine.low %v902_v18, %v926_v9  ;;  %v499_v33 = vcombine.high %v2178_v48, %v1975_v56 }
 0x1a9   :  { %v514_v36 = vcombine.low %v459_v19, %v475_v13  ;;  %v547_v50 = vcombine.high %v491_v6, %v506_v15  ;;  %v2296_v53 = vcombine.high %v665_v44, %v689_v29  ;;  %v2298_v48 = vcombine.low %v665_v44, %v689_v29 }
 0x1aa   :  { %v554_v23 = vrot.slane %v546_v28, %v2211_v5  ;;  %v513_v34 = vrot.slane %v499_v33, %v2158_v37  ;;  %v482_v54 = vrot.slane %v468_v35, %v2158_v37  ;;  %v515_v55 = vcombine.high %v459_v19, %v475_v13 }
 0x1ab   :  { %v522_v17 = vrot.slane %v514_v36, %v2211_v5  ;;  %v561_v63 = vrot.slane %v547_v50, %v2211_v5  ;;  %v712_v14 = vcombine.low %v2186_v52, %v2160_v39  ;;  %v736_v6 = vrot.slane %v728_v31, %v2158_v37 }
 0x1ac   :  { %989 = vrot.lane.b32.xlu0 %v2246_v47, %s1974_s19  ;;  %991 = vrot.lane.b32.xlu1 %v2248_v57, %s1974_s19  ;;  %v562_v21 = vcombine.low %v498_v38, %v513_v34  ;;  %v530_v0 = vcombine.low %v466_v25, %v482_v54  ;;  %v529_v24 = vrot.slane %v515_v55, %v2211_v5 }
 0x1ad   :  { %v2311_v42 = vcombine.high %v522_v17, %v554_v23  ;;  %v2313_v61 = vcombine.low %v522_v17, %v554_v23  ;;  %v563_v4 = vcombine.high %v498_v38, %v513_v34  ;;  %v531_v52 = vcombine.high %v466_v25, %v482_v54 }
 0x1ae   :  { %v2326_v8 = vcombine.high %v529_v24, %v561_v63  ;;  %v2328_v9 = vcombine.low %v529_v24, %v561_v63  ;;  %v570_v39 = vrot.slane %v562_v21, %v2211_v5  ;;  %v720_v12 = vrot.slane %v712_v14, %v2158_v37 }
 0x1af   :  { %v751_v13 = vrot.slane %v2202_v62, %v2158_v37  ;;  %v538_v20 = vrot.slane %v530_v0, %v2211_v5  ;;  %v729_v15 = vcombine.high %v2176_v46, %v2200_v60  ;;  %v744_v18 = vcombine.high %v2202_v62, %v1975_v56 }
 0x1b0   :  { %1015 = vrot.lane.b32.xlu1 %v2264_v10, %s1974_s19  ;;  %1013 = vrot.lane.b32.xlu0 %v2266_v11, %s1974_s19  ;;  %v577_v29 = vrot.slane %v563_v4, %v2211_v5  ;;  %v759_v33 = vcombine.low %v704_v30, %v720_v12  ;;  %v545_v35 = vrot.slane %v531_v52, %v2211_v5 }
 0x1b1   :  { %v791_v19 = vcombine.low %v736_v6, %v751_v13  ;;  %v2344_v27 = vcombine.high %v538_v20, %v570_v39  ;;  %v2346_v28 = vcombine.low %v538_v20, %v570_v39  ;;  %v743_v46 = vrot.slane %v729_v15, %v2158_v37 }
 0x1b2   :  { %v758_v60 = vrot.slane %v744_v18, %v2158_v37  ;;  %v792_v62 = vcombine.high %v736_v6, %v751_v13  ;;  %v2357_v44 = vcombine.high %v545_v35, %v577_v29  ;;  %v2359_v51 = vcombine.low %v545_v35, %v577_v29 }
 0x1b3   :  { %v799_v36 = vrot.slane %v791_v19, %v2211_v5  ;;  %v760_v38 = vcombine.high %v704_v30, %v720_v12  ;;  %v767_v50 = vrot.slane %v759_v33, %v2211_v5  ;;  %v864_v17 = vcombine.high %v2174_v45, %v2180_v49 }
 0x1b4   :  { %1019 = vrot.lane.b32.xlu1 %v2280_v22, %s1974_s19  ;;  %1017 = vrot.lane.b32.xlu0 %v2282_v32, %s1974_s19  ;;  %v806_v23 = vrot.slane %v792_v62, %v2211_v5  ;;  %v807_v34 = vcombine.low %v743_v46, %v758_v60  ;;  %v886_v21 = vcombine.high %v2214_v7, %v1975_v56 }
 0x1b5   :  { %v2367_v54 = vcombine.high %v767_v50, %v799_v36  ;;  %v2369_v55 = vcombine.low %v767_v50, %v799_v36  ;;  %v774_v25 = vrot.slane %v760_v38, %v2211_v5  ;;  %v808_v31 = vcombine.high %v743_v46, %v758_v60 }
 0x1b6   :  { %v815_v14 = vrot.slane %v807_v34, %v2211_v5  ;;  %v878_v45 = vrot.slane %v864_v17, %v2158_v37  ;;  %v783_v49 = vrot.slane %v775_v1, %v2211_v5  ;;  %v790_v6 = vrot.slane %v776_v2, %v2211_v5 }
 0x1b7   :  { %v2380_v63 = vcombine.high %v774_v25, %v806_v23  ;;  %v2382_v0 = vcombine.low %v774_v25, %v806_v23  ;;  %v822_v4 = vrot.slane %v808_v31, %v2211_v5  ;;  %v910_v12 = vrot.slane %v903_v43, %v2211_v5 }
 0x1b8   :  { %995 = vrot.lane.b32.xlu1 %v2296_v53, %s1974_s19  ;;  %993 = vrot.lane.b32.xlu0 %v2298_v48, %s1974_s19  ;;  %v927_v7 = vcombine.low %v878_v45, %v886_v21  ;;  %v2394_v24 = vcombine.high %v783_v49, %v815_v14  ;;  %v2396_v3 = vcombine.low %v783_v49, %v815_v14 }
 0x1b9   :  { %v2408_v39 = vcombine.high %v790_v6, %v822_v4  ;;  %v2410_v52 = vcombine.low %v790_v6, %v822_v4 }
 0x1ba   :  { %v934_v1 = vrot.slane %v927_v7, %v2211_v5 }
 0x1bc   :  { %971 = vrot.lane.b32.xlu1 %v2311_v42, %s1974_s19  ;;  %969 = vrot.lane.b32.xlu0 %v2313_v61, %s1974_s19  ;;  %v2420_v13 = vcombine.high %v910_v12, %v934_v1  ;;  %v2422_v58 = vcombine.low %v910_v12, %v934_v1 }
 0x1c0   :  { %975 = vrot.lane.b32.xlu1 %v2326_v8, %s1974_s19  ;;  %973 = vrot.lane.b32.xlu0 %v2328_v9, %s1974_s19 }
 0x1c4   :  { %979 = vrot.lane.b32.xlu1 %v2344_v27, %s1974_s19  ;;  %977 = vrot.lane.b32.xlu0 %v2346_v28, %s1974_s19 }
 0x1c8   :  { %983 = vrot.lane.b32.xlu1 %v2357_v44, %s1974_s19  ;;  %981 = vrot.lane.b32.xlu0 %v2359_v51, %s1974_s19 }
 0x1cc   :  { %999 = vrot.lane.b32.xlu1 %v2367_v54, %s1974_s19  ;;  %997 = vrot.lane.b32.xlu0 %v2369_v55, %s1974_s19 }
 0x1d0   :  { %1003 = vrot.lane.b32.xlu1 %v2380_v63, %s1974_s19  ;;  %1001 = vrot.lane.b32.xlu0 %v2382_v0, %s1974_s19 }
 0x1d4   :  { %1007 = vrot.lane.b32.xlu1 %v2394_v24, %s1974_s19  ;;  %1005 = vrot.lane.b32.xlu0 %v2396_v3, %s1974_s19 }
 0x1d8   :  { %1011 = vrot.lane.b32.xlu1 %v2408_v39, %s1974_s19  ;;  %1009 = vrot.lane.b32.xlu0 %v2410_v52, %s1974_s19 }
 0x1dc   :  { %1023 = vrot.lane.b32.xlu1 %v2420_v13, %s1974_s19  ;;  %1021 = vrot.lane.b32.xlu0 %v2422_v58, %s1974_s19 }
 0x21a   :  { %v986_v59 = vpop.permute.xlu0 %985  ;;  %v988_v2 = vpop.permute.xlu1 %987 }
 0x21b   :  { %v1061_v40 = vadd.f32 %v986_v59, %v2228_v16  ;;  %v1062_v41 = vadd.f32 %v988_v2, %v2230_v26 }
 0x21d   :  { %v2440_v35 = vmul.f32 0.5, %v1061_v40  ;;  %v2442_v46 = vmul.f32 0.5, %v1062_v41 }
 0x21e   :  { %v990_v20 = vpop.permute.xlu0 %989  ;;  %v992_v30 = vpop.permute.xlu1 %991 }
 0x21f   :  { %v1063_v15 = vadd.f32 %v990_v20, %v2246_v47  ;;  %v1064_v18 = vadd.f32 %v992_v30, %v2248_v57 }
 0x221   :  { %v2436_v29 = vmul.f32 0.5, %v1063_v15  ;;  %v2438_v33 = vmul.f32 0.5, %v1064_v18 }
 0x222   :  { %v2432_v43 = vpop.permute.xlu0 %1013  ;;  %v2434_v19 = vpop.permute.xlu1 %1015 }
 0x223   :  { %v1244_v57 = vcombine.low %v2440_v35, %v2436_v29  ;;  %v1260_v16 = vcombine.low %v2442_v46, %v2438_v33 }
 0x225   :  { %v2451_v50 = vrot.slane %v1244_v57, %v2158_v37  ;;  %v2454_v23 = vrot.slane %v1260_v16, %v2158_v37 }
 0x226   :  { %v1018_v60 = vpop.permute.xlu0 %1017  ;;  %v1020_v47 = vpop.permute.xlu1 %1019 }
 0x22a   :  { %v994_v26 = vpop.permute.xlu0 %993  ;;  %v996_v62 = vpop.permute.xlu1 %995 }
 0x22b   :  { %v1065_v36 = vadd.f32 %v994_v26, %v2298_v48  ;;  %v1066_v38 = vadd.f32 %v996_v62, %v2296_v53  ;;  %v1306_v53 = vcombine.low %v2451_v50, %v2454_v23 }
 0x22d   :  { %v2456_v34 = vmul.f32 0.5, %v1065_v36  ;;  %v2458_v17 = vmul.f32 0.5, %v1066_v38  ;;  %v2477_v12 = vrot.slane %v1306_v53, %v2211_v5 }
 0x22e   :  { %v970_v25 = vpop.permute.xlu0 %969  ;;  %v972_v21 = vpop.permute.xlu1 %971 }
 0x22f   :  { %v2462_v31 = vrot.slane %v2456_v34, %v2158_v37  ;;  %v2466_v48 = vrot.slane %v2458_v17, %v2158_v37  ;;  %v1053_v7 = vadd.f32 %v970_v25, %v2313_v61  ;;  %v1054_v4 = vadd.f32 %v972_v21, %v2311_v42 }
 0x231   :  { %v1338_v14 = vcombine.low %v2462_v31, %v2466_v48  ;;  %v2488_v42 = vmul.f32 0.5, %v1053_v7  ;;  %v1078_v7 = vadd.f32 %v1020_v47, %v2280_v22  ;;  %v1075_v22 = vadd.f32 %v2432_v43, %v2266_v11 }
 0x232   :  { %v974_v45 = vpop.permute.xlu0 %973  ;;  %v976_v49 = vpop.permute.xlu1 %975  ;;  %v1076_v47 = vadd.f32 %v2434_v19, %v2264_v10 }
 0x233   :  { %v1055_v6 = vadd.f32 %v974_v45, %v2328_v9  ;;  %v1056_v1 = vadd.f32 %v976_v49, %v2326_v8  ;;  %v2480_v59 = vrot.slane %v1338_v14, %v2211_v5  ;;  %v2490_v9 = vmul.f32 0.5, %v1054_v4 }
 0x234   :  { %v1077_v49 = vadd.f32 %v1018_v60, %v2282_v32  ;;  %v2553_v11 = vmul.f32 0.5, %v1078_v7  ;;  %v2559_v10 = vmul.f32 0.5, %v1075_v22 }
 0x235   :  { %v2482_v2 = vmul.f32 0.5, %v1055_v6  ;;  %v2484_v20 = vmul.f32 0.5, %v1056_v1  ;;  %v1371_v61 = vcombine.high %v2477_v12, %v2480_v59  ;;  %v1370_v36 = vcombine.low %v2477_v12, %v2480_v59 }
 0x236   :  { %v978_v30 = vpop.permute.xlu0 %977  ;;  %v980_v15 = vpop.permute.xlu1 %979 }
 0x237   :  { %1651 = vrot.lane.b32.xlu1 %v1371_v61, %s1976_s20  ;;  %v1109_v8 = vcombine.low %v2488_v42, %v2482_v2  ;;  %v1125_v18 = vcombine.low %v2490_v9, %v2484_v20  ;;  %v1057_v40 = vadd.f32 %v978_v30, %v2346_v28  ;;  %v1058_v41 = vadd.f32 %v980_v15, %v2344_v27 }
 0x239   :  { %v2504_v38 = vrot.slane %v1109_v8, %v2158_v37  ;;  %v2507_v25 = vrot.slane %v1125_v18, %v2158_v37  ;;  %v2509_v21 = vmul.f32 0.5, %v1057_v40  ;;  %v2511_v28 = vmul.f32 0.5, %v1058_v41 }
 0x23a   :  { %v982_v57 = vpop.permute.xlu0 %981  ;;  %v984_v16 = vpop.permute.xlu1 %983 }
 0x23b   :  { %v1059_v26 = vadd.f32 %v982_v57, %v2359_v51  ;;  %v1060_v62 = vadd.f32 %v984_v16, %v2357_v44  ;;  %v1173_v4 = vcombine.low %v2504_v38, %v2507_v25 }
 0x23d   :  { %v2513_v27 = vmul.f32 0.5, %v1059_v26  ;;  %v2515_v53 = vmul.f32 0.5, %v1060_v62  ;;  %v2563_v26 = vmul.f32 0.5, %v1076_v47 }
 0x23e   :  { %v998_v51 = vpop.permute.xlu0 %997  ;;  %v1000_v14 = vpop.permute.xlu1 %999 }
 0x23f   :  { %v1141_v44 = vcombine.low %v2509_v21, %v2513_v27  ;;  %v1157_v45 = vcombine.low %v2511_v28, %v2515_v53  ;;  %v1067_v61 = vadd.f32 %v998_v51, %v2369_v55  ;;  %v1068_v8 = vadd.f32 %v1000_v14, %v2367_v54 }
 0x240   :  { %v2546_v54 = vrot.slane %v1173_v4, %v2211_v5  ;;  %v1528_v4 = vcombine.low %v2563_v26, %v2553_v11 }
 0x241   :  { %v2526_v6 = vrot.slane %v1141_v44, %v2158_v37  ;;  %v2529_v1 = vrot.slane %v1157_v45, %v2158_v37  ;;  %v2555_v43 = vmul.f32 0.5, %v1067_v61  ;;  %v2557_v16 = vmul.f32 0.5, %v1068_v8 }
 0x242   :  { %v1002_v30 = vpop.permute.xlu0 %1001  ;;  %v1004_v15 = vpop.permute.xlu1 %1003 }
 0x243   :  { %v1069_v18 = vadd.f32 %v1002_v30, %v2382_v0  ;;  %v1070_v32 = vadd.f32 %v1004_v15, %v2380_v63  ;;  %v1205_v60 = vcombine.low %v2526_v6, %v2529_v1  ;;  %v2551_v0 = vmul.f32 0.5, %v1077_v49 }
 0x245   :  { %v2541_v40 = vmul.f32 0.5, %v1069_v18  ;;  %v2543_v41 = vmul.f32 0.5, %v1070_v32  ;;  %v2549_v63 = vrot.slane %v1205_v60, %v2211_v5  ;;  %v1512_v7 = vcombine.low %v2559_v10, %v2551_v0 }
 0x246   :  { %v1006_v55 = vpop.permute.xlu0 %1005  ;;  %v1008_v57 = vpop.permute.xlu1 %1007 }
 0x247   :  { %v1238_v19 = vcombine.high %v2546_v54, %v2549_v63  ;;  %v1377_v62 = vcombine.low %v2555_v43, %v2541_v40  ;;  %v1393_v51 = vcombine.low %v2557_v16, %v2543_v41  ;;  %v1071_v14 = vadd.f32 %v1006_v55, %v2396_v3 }
 0x248   :  { %v1072_v44 = vadd.f32 %v1008_v57, %v2394_v24  ;;  %v1237_v47 = vcombine.low %v2546_v54, %v2549_v63 }
 0x249   :  { %1649 = vrot.lane.b32.xlu0 %v1238_v19, %s1976_s20  ;;  %v1385_v61 = vrot.slane %v1377_v62, %v2158_v37  ;;  %v1401_v3 = vrot.slane %v1393_v51, %v2158_v37  ;;  %v2580_v8 = vmul.f32 0.5, %v1071_v14 }
 0x24a   :  { %v1010_v45 = vpop.permute.xlu0 %1009  ;;  %v1012_v49 = vpop.permute.xlu1 %1011  ;;  %v2582_v24 = vmul.f32 0.5, %v1072_v44 }
 0x24b   :  { %v1073_v30 = vadd.f32 %v1010_v45, %v2410_v52  ;;  %v1074_v15 = vadd.f32 %v1012_v49, %v2408_v39  ;;  %v1520_v52 = vrot.slane %v1512_v7, %v2158_v37  ;;  %v1536_v39 = vrot.slane %v1528_v4, %v2158_v37 }
 0x24c   :  { %v1441_v44 = vcombine.low %v1385_v61, %v1401_v3 }
 0x24d   :  { %v2584_v18 = vmul.f32 0.5, %v1073_v30  ;;  %v2586_v32 = vmul.f32 0.5, %v1074_v15  ;;  %v1574_v7 = vcombine.low %v1520_v52, %v1536_v39  ;;  %v1339_v15 = vcombine.high %v2462_v31, %v2466_v48 }
 0x24e   :  { %v1022_v22 = vpop.permute.xlu0 %1021  ;;  %v1024_v60 = vpop.permute.xlu1 %1023 }
 0x24f   :  { %v1079_v55 = vadd.f32 %v1022_v22, %v2422_v58  ;;  %v1080_v57 = vadd.f32 %v1024_v60, %v2420_v13  ;;  %v1409_v19 = vcombine.low %v2580_v8, %v2584_v18  ;;  %v1425_v62 = vcombine.low %v2582_v24, %v2586_v32 }
 0x250   :  { %v1206_v13 = vcombine.high %v2526_v6, %v2529_v1  ;;  %v1307_v60 = vcombine.high %v2451_v50, %v2454_v23  ;;  %v1442_v1 = vcombine.high %v1385_v61, %v1401_v3  ;;  %v1158_v3 = vcombine.high %v2511_v28, %v2515_v53 }
 0x251   :  { %v1107_v51 = vmul.f32 0.5, %v1079_v55  ;;  %v1108_v14 = vmul.f32 0.5, %v1080_v57  ;;  %v1417_v45 = vrot.slane %v1409_v19, %v2158_v37  ;;  %v1433_v49 = vrot.slane %v1425_v62, %v2158_v37 }
 0x252   :  { %v1174_v55 = vcombine.high %v2504_v38, %v2507_v25  ;;  %v2611_v57 = vrot.slane %v1441_v44, %v2211_v5  ;;  %v2617_v62 = vrot.slane %v1574_v7, %v2211_v5  ;;  %v1220_v50 = vrot.slane %v1206_v13, %v2211_v5 }
 0x253   :  { %v1551_v4 = vrot.slane %v1107_v51, %v2158_v37  ;;  %v1566_v58 = vrot.slane %v1108_v14, %v2158_v37  ;;  %v1473_v30 = vcombine.low %v1417_v45, %v1433_v49  ;;  %v1474_v31 = vcombine.high %v1417_v45, %v1433_v49 }
 0x254   :  { %v1353_v25 = vrot.slane %v1339_v15, %v2211_v5  ;;  %v1188_v44 = vrot.slane %v1174_v55, %v2211_v5  ;;  %v1321_v7 = vrot.slane %v1307_v60, %v2211_v5  ;;  %v1575_v49 = vcombine.high %v1520_v52, %v1536_v39 }
 0x255   :  { %v1606_v22 = vcombine.low %v1551_v4, %v1566_v58  ;;  %v2614_v19 = vrot.slane %v1473_v30, %v2211_v5  ;;  %v1607_v23 = vcombine.high %v1551_v4, %v1566_v58  ;;  %v1276_v13 = vcombine.high %v2456_v34, %v1975_v56 }
 0x256   :  { %v1142_v4 = vcombine.high %v2509_v21, %v2513_v27  ;;  %v1239_v58 = vcombine.low %v1188_v44, %v1220_v50  ;;  %v1488_v30 = vrot.slane %v1474_v31, %v2211_v5  ;;  %v1291_v52 = vcombine.high %v2458_v17, %v1975_v56 }
 0x257   :  { %v2620_v6 = vrot.slane %v1606_v22, %v2211_v5  ;;  %v1506_v48 = vcombine.high %v2611_v57, %v2614_v19  ;;  %v1505_v45 = vcombine.low %v2611_v57, %v2614_v19  ;;  %v1372_v39 = vcombine.low %v1321_v7, %v1353_v25 }
 0x258   :  { %v1621_v34 = vrot.slane %v1607_v23, %v2211_v5  ;;  %v1245_v21 = vcombine.high %v2440_v35, %v2436_v29  ;;  %v1110_v27 = vcombine.high %v2488_v42, %v2482_v2  ;;  %v1126_v15 = vcombine.high %v2490_v9, %v2484_v20 }
 0x259   :  { %v1639_v38 = vcombine.high %v2617_v62, %v2620_v6  ;;  %1653 = vrot.lane.b32.xlu0 %v1506_v48, %s1976_s20  ;;  %v1638_v61 = vcombine.low %v2617_v62, %v2620_v6  ;;  %v1456_v28 = vrot.slane %v1442_v1, %v2211_v5  ;;  %v1261_v53 = vcombine.high %v2442_v46, %v2438_v33 }
 0x25a   :  { %v2656_v17 = vrot.slane %v1276_v13, %v2158_v37  ;;  %v2659_v22 = vrot.slane %v1142_v4, %v2158_v37  ;;  %v1589_v29 = vrot.slane %v1575_v49, %v2211_v5  ;;  %v2663_v35 = vrot.slane %v1158_v3, %v2158_v37 }
 0x25b   :  { %1655 = vrot.lane.b32.xlu1 %v1639_v38, %s1976_s20  ;;  %v1410_v2 = vcombine.high %v2580_v8, %v2584_v18  ;;  %v1426_v20 = vcombine.high %v2582_v24, %v2586_v32  ;;  %v1507_v42 = vcombine.low %v1456_v28, %v1488_v30  ;;  %v2670_v33 = vrot.slane %v1291_v52, %v2158_v37 }
 0x25c   :  { %v1544_v46 = vcombine.high %v1107_v51, %v1975_v56  ;;  %v1559_v9 = vcombine.high %v1108_v14, %v1975_v56  ;;  %v1640_v60 = vcombine.low %v1589_v29, %v1621_v34  ;;  %v2675_v55 = vrot.slane %v1110_v27, %v2158_v37 }
 0x25d   :  { %1665 = vrot.lane.b32.xlu0 %v1239_v58, %s1977_s21  ;;  %v2678_v31 = vrot.slane %v1126_v15, %v2158_v37  ;;  %v1378_v8 = vcombine.high %v2555_v43, %v2541_v40  ;;  %v1394_v24 = vcombine.high %v2557_v16, %v2543_v41  ;;  %v2685_v18 = vrot.slane %v1245_v21, %v2158_v37 }
 0x25e   :  { %v2688_v32 = vrot.slane %v1261_v53, %v2158_v37  ;;  %v1513_v56 = vcombine.high %v2559_v10, %v2551_v0  ;;  %v1529_v51 = vcombine.high %v2563_v26, %v2553_v11  ;;  %v1221_v40 = vcombine.low %v2659_v22, %v2663_v35 }
 0x25f   :  { %1667 = vrot.lane.b32.xlu1 %v1372_v39, %s1977_s21  ;;  %v2697_v43 = vrot.slane %v1410_v2, %v2158_v37  ;;  %v1440_v41 = vrot.slane %v1426_v20, %v2158_v37  ;;  %v1240_v16 = vcombine.high %v1188_v44, %v1220_v50  ;;  %v1354_v14 = vcombine.low %v2656_v17, %v2670_v33 }
 0x260   :  { %v1558_v48 = vrot.slane %v1544_v46, %v2158_v37  ;;  %v1573_v0 = vrot.slane %v1559_v9, %v2158_v37  ;;  %v1373_v10 = vcombine.high %v1321_v7, %v1353_v25  ;;  %v1189_v11 = vcombine.low %v2675_v55, %v2678_v31 }
 0x261   :  { %1669 = vrot.lane.b32.xlu0 %v1507_v42, %s1977_s21  ;;  %v1392_v26 = vrot.slane %v1378_v8, %v2158_v37  ;;  %v1408_v23 = vrot.slane %v1394_v24, %v2158_v37  ;;  %v1322_v50 = vcombine.low %v2685_v18, %v2688_v32  ;;  %v1527_v38 = vrot.slane %v1513_v56, %v2158_v37 }
 0x262   :  { %v1543_v1 = vrot.slane %v1529_v51, %v2158_v37  ;;  %v1489_v44 = vcombine.low %v2697_v43, %v1440_v41  ;;  %v1508_v25 = vcombine.high %v1456_v28, %v1488_v30  ;;  %v1229_v7 = vrot.slane %v1221_v40, %v2211_v5 }
 0x263   :  { %1671 = vrot.lane.b32.xlu1 %v1640_v60, %s1977_s21  ;;  %v1622_v49 = vcombine.low %v1558_v48, %v1573_v0  ;;  %v1641_v13 = vcombine.high %v1589_v29, %v1621_v34  ;;  %v1362_v4 = vrot.slane %v1354_v14, %v2211_v5  ;;  %v1457_v3 = vcombine.low %v1392_v26, %v1408_v23 }
 0x264   :  { %v1197_v58 = vrot.slane %v1189_v11, %v2211_v5  ;;  %v1590_v52 = vcombine.low %v1527_v38, %v1543_v1  ;;  %v1330_v39 = vrot.slane %v1322_v50, %v2211_v5  ;;  %v1497_v37 = vrot.slane %v1489_v44, %v2211_v5 }
 0x265   :  { %1681 = vrot.lane.b32.xlu0 %v1240_v16, %s1978_s22  ;;  %v1630_v30 = vrot.slane %v1622_v49, %v2211_v5  ;;  %v1465_v34 = vrot.slane %v1457_v3, %v2211_v5  ;;  %v1222_v29 = vcombine.high %v2659_v22, %v2663_v35  ;;  %v1355_v20 = vcombine.high %v2656_v17, %v2670_v33 }
 0x266   :  { %v1241_v21 = vcombine.low %v1197_v58, %v1229_v7  ;;  %v1374_v27 = vcombine.low %v1330_v39, %v1362_v4  ;;  %v1598_v15 = vrot.slane %v1590_v52, %v2211_v5  ;;  %v1242_v2 = vcombine.high %v1197_v58, %v1229_v7 }
 0x267   :  { %1683 = vrot.lane.b32.xlu1 %v1373_v10, %s1978_s22  ;;  %v1509_v28 = vcombine.low %v1465_v34, %v1497_v37  ;;  %v1375_v42 = vcombine.high %v1330_v39, %v1362_v4  ;;  %v1190_v46 = vcombine.high %v2675_v55, %v2678_v31  ;;  %v1323_v9 = vcombine.high %v2685_v18, %v2688_v32 }
 0x268   :  { %v1642_v53 = vcombine.low %v1598_v15, %v1630_v30  ;;  %v1490_v60 = vcombine.high %v2697_v43, %v1440_v41  ;;  %v1510_v8 = vcombine.high %v1465_v34, %v1497_v37  ;;  %v1236_v24 = vrot.slane %v1222_v29, %v2211_v5 }
 0x269   :  { %1685 = vrot.lane.b32.xlu0 %v1508_v25, %s1978_s22  ;;  %v1623_v22 = vcombine.high %v1558_v48, %v1573_v0  ;;  %v1643_v35 = vcombine.high %v1598_v15, %v1630_v30  ;;  %v1369_v56 = vrot.slane %v1355_v20, %v2211_v5  ;;  %v1458_v17 = vcombine.high %v1392_v26, %v1408_v23 }
 0x26a   :  { %v1204_v33 = vrot.slane %v1190_v46, %v2211_v5  ;;  %v1591_v55 = vcombine.high %v1527_v38, %v1543_v1  ;;  %v1337_v31 = vrot.slane %v1323_v9, %v2211_v5  ;;  %v1504_v18 = vrot.slane %v1490_v60, %v2211_v5 }
 0x26b   :  { %1687 = vrot.lane.b32.xlu1 %v1641_v13, %s1978_s22  ;;  %v1637_v40 = vrot.slane %v1623_v22, %v2211_v5  ;;  %v1472_v43 = vrot.slane %v1458_v17, %v2211_v5 }
 0x26c   :  { %v1243_v51 = vcombine.low %v1204_v33, %v1236_v24  ;;  %v1376_v32 = vcombine.low %v1337_v31, %v1369_v56  ;;  %v1605_v41 = vrot.slane %v1591_v55, %v2211_v5 }
 0x26d   :  { %1697 = vrot.lane.b32.xlu0 %v1241_v21, %s1970_s17  ;;  %v1511_v16 = vcombine.low %v1472_v43, %v1504_v18 }
 0x26e   :  { %v1644_v14 = vcombine.low %v1605_v41, %v1637_v40 }
 0x26f   :  { %1699 = vrot.lane.b32.xlu1 %v1374_v27, %s1970_s17 }
 0x271   :  { %1701 = vrot.lane.b32.xlu0 %v1509_v28, %s1970_s17 }
 0x273   :  { %1703 = vrot.lane.b32.xlu1 %v1642_v53, %s1970_s17 }
 0x275   :  { %1713 = vrot.lane.b32.xlu0 %v1242_v2, %s1979_s23 }
 0x277   :  { %1715 = vrot.lane.b32.xlu1 %v1375_v42, %s1979_s23 }
 0x279   :  { %1717 = vrot.lane.b32.xlu0 %v1510_v8, %s1979_s23 }
 0x27b   :  { %1719 = vrot.lane.b32.xlu1 %v1643_v35, %s1979_s23 }
 0x27d   :  { %1729 = vrot.lane.b32.xlu0 %v1243_v51, %s1971_s18 }
 0x27f   :  { %1731 = vrot.lane.b32.xlu1 %v1376_v32, %s1971_s18 }
 0x281   :  { %1733 = vrot.lane.b32.xlu0 %v1511_v16, %s1971_s18 }
 0x283   :  { %1735 = vrot.lane.b32.xlu1 %v1644_v14, %s1971_s18 }
 0x2a9   :  { %v1652_v0 = vpop.permute.xlu1 %1651 }
 0x2aa   :  { %v1743_v21 = vsel %vm1741_vm7, %v1370_v36, %v1652_v0 }
 0x2bb   :  { %v1650_v48 = vpop.permute.xlu0 %1649 }
 0x2bc   :  { %v1742_v52 = vsel %vm1741_vm7, %v1237_v47, %v1650_v48 }
 0x2cb   :  { %v1654_v10 = vpop.permute.xlu0 %1653 }
 0x2cc   :  { %v1744_v12 = vsel %vm1741_vm7, %v1505_v45, %v1654_v10 }
 0x2cd   :  { %v1656_v11 = vpop.permute.xlu1 %1655 }
 0x2ce   :  { %v1745_v15 = vsel %vm1741_vm7, %v1638_v61, %v1656_v11 }
 0x2cf   :  { %v1666_v26 = vpop.permute.xlu0 %1665 }
 0x2d0   :  { %v1747_v37 = vsel %vm1746_vm8, %v1742_v52, %v1666_v26 }
 0x2d1   :  { %v1668_v23 = vpop.permute.xlu1 %1667 }
 0x2d2   :  { %v1748_v30 = vsel %vm1746_vm8, %v1743_v21, %v1668_v23 }
 0x2d3   :  { %v1670_v50 = vpop.permute.xlu0 %1669 }
 0x2d4   :  { %v1749_v28 = vsel %vm1746_vm8, %v1744_v12, %v1670_v50 }
 0x2d5   :  { %v1672_v38 = vpop.permute.xlu1 %1671 }
 0x2d6   :  { %v1750_v19 = vsel %vm1746_vm8, %v1745_v15, %v1672_v38 }
 0x2d7   :  { %v1682_v1 = vpop.permute.xlu0 %1681 }
 0x2d8   :  { %v1752_v34 = vsel %vm1751_vm9, %v1747_v37, %v1682_v1 }
 0x2d9   :  { %v1684_v44 = vpop.permute.xlu1 %1683 }
 0x2da   :  { %v1753_v54 = vsel %vm1751_vm9, %v1748_v30, %v1684_v44 }
 0x2db   :  { %v1686_v25 = vpop.permute.xlu0 %1685 }
 0x2dc   :  { %v1754_v45 = vsel %vm1751_vm9, %v1749_v28, %v1686_v25 }
 0x2dd   :  { %v1688_v7 = vpop.permute.xlu1 %1687 }
 0x2de   :  { %v1755_v6 = vsel %vm1751_vm9, %v1750_v19, %v1688_v7 }
 0x2df   :  { %v1698_v49 = vpop.permute.xlu0 %1697 }
 0x2e0   :  { %v1757_v63 = vsel %vm1756_vm10, %v1752_v34, %v1698_v49 }
 0x2e1   :  { %v1700_v5 = vpop.permute.xlu1 %1699 }
 0x2e2   :  { %v1758_v59 = vsel %vm1756_vm10, %v1753_v54, %v1700_v5 }
 0x2e3   :  { %v1702_v13 = vpop.permute.xlu0 %1701 }
 0x2e4   :  { %v1759_v61 = vsel %vm1756_vm10, %v1754_v45, %v1702_v13 }
 0x2e5   :  { %v1704_v4 = vpop.permute.xlu1 %1703 }
 0x2e6   :  { %v1760_v2 = vsel %vm1756_vm10, %v1755_v6, %v1704_v4 }
 0x2e7   :  { %v1714_v3 = vpop.permute.xlu0 %1713 }
 0x2e8   :  { %v1762_v36 = vsel %vm1761_vm11, %v1757_v63, %v1714_v3 }
 0x2e9   :  { %v1716_v58 = vpop.permute.xlu1 %1715 }
 0x2ea   :  { %v1763_v53 = vsel %vm1761_vm11, %v1758_v59, %v1716_v58 }
 0x2eb   :  { %v1718_v39 = vpop.permute.xlu0 %1717 }
 0x2ec   :  { %v1764_v20 = vsel %vm1761_vm11, %v1759_v61, %v1718_v39 }
 0x2ed   :  { %v1720_v27 = vpop.permute.xlu1 %1719 }
 0x2ee   :  { %v1765_v46 = vsel %vm1761_vm11, %v1760_v2, %v1720_v27 }
 0x2ef   :  { %v1730_v47 = vpop.permute.xlu0 %1729 }
 0x2f0   :  { %v1767_v29 = vsel %vm1766_vm12, %v1762_v36, %v1730_v47 }
 0x2f1   :  { %v1732_v57 = vpop.permute.xlu1 %1731  ;;  %1772 = vst.msk [vmem:[%s2801_s3] sm:$0xff] %vm1771_vm13, %v1767_v29 }
 0x2f2   :  { %v1768_v62 = vsel %vm1766_vm12, %v1763_v53, %v1732_v57 }
 0x2f3   :  { %1774 = vst.msk [vmem:[%s2801_s3 + $0x8] sm:$0x3f] %vm1773_vm14, %v1768_v62  ;;  %v1734_v42 = vpop.permute.xlu0 %1733 }
 0x2f4   :  { %v1769_v9 = vsel %vm1766_vm12, %v1764_v20, %v1734_v42 }
 0x2f5   :  { %v1736_v60 = vpop.permute.xlu1 %1735  ;;  %1775 = vst.msk [vmem:[%s2801_s3 + $0x10] sm:$0xff] %vm1771_vm13, %v1769_v9 }
 0x2f6   :  { %v1770_v8 = vsel %vm1766_vm12, %v1765_v46, %v1736_v60 }
 0x2f7   :  { %1776 = vst.msk [vmem:[%s2801_s3 + $0x18] sm:$0x3f] %vm1773_vm14, %v1770_v8 }

</bundles_post_ra>
